<compile_context>
chip_gen: v5e
topology: v5e:2x2
jax: 0.10.0
libtpu: 0.0.40
codegen_flags: <defaults>
</compile_context>

<pallas_src>
import jax
import jax.numpy as jnp
import numpy as np
from jax.experimental import pallas as pl
from jax.experimental.pallas import tpu as pltpu

_LANES = 128  # TPU vreg lane width; trailing block dim should be a multiple of this.


def _copy_kernel(x_ref, o_ref):
    # The reference forward defines no computation; faithful translation is a copy.
    o_ref[...] = x_ref[...]


def _pick_row_tile(num_rows: int) -> int:
    """Largest row tile (multiple of 8, <= 1024 rows) evenly dividing num_rows.

    1024 rows x 128 lanes x 4 B = 512 KiB per block; with input+output double
    buffering that is ~2 MiB of VMEM -> safe on v5e/v6e/v7x.
    """
    for cand in (1024, 512, 256, 128, 64, 32, 16, 8):
        if num_rows % cand == 0:
            return cand
    # Not a multiple of 8: the only legal block is the full array extent.
    return num_rows


def mel_model_forward(hubert_vector: jax.Array, speaker_id: jax.Array):
    """Pallas 'forward' for MelModel.

    hubert_vector: (B, T, H) float32
    speaker_id:    (B,)      int32   (passed through; unused by the undefined forward)
    """
    B, T, H = hubert_vector.shape
    total = B * T * H

    if total % _LANES == 0:
        # Lane-dense 2D layout: every row is exactly one 128-lane vreg row.
        rows = total // _LANES
        flat = hubert_vector.reshape(rows, _LANES)
        row_tile = _pick_row_tile(rows)
        grid = (rows // row_tile,)
        block = (row_tile, _LANES)
    else:
        # TODO(synk): trailing size not a multiple of 128 -> lane-sparse stores;
        #             fall back to a single full-array block (correct, just not
        #             lane-dense).
        rows, cols = B * T, H
        flat = hubert_vector.reshape(rows, cols)
        grid = (1,)
        block = (rows, cols)  # block == full array dims -> (8,128) rule satisfied

    out_flat = pl.pallas_call(
        _copy_kernel,
        out_shape=jax.ShapeDtypeStruct(flat.shape, flat.dtype),
        grid_spec=pl.GridSpec(
            grid=grid,
            in_specs=[pl.BlockSpec(block, lambda i: (i, 0))],
            out_specs=pl.BlockSpec(block, lambda i: (i, 0)),
        ),
        # Output aliases the (temporary) reshaped input buffer: no fresh HBM
        # allocation; under jit with buffer donation the identity is a no-op.
        input_output_aliases={0: 0},
        compiler_params=pltpu.CompilerParams(
            dimension_semantics=("parallel",),
        ),
    )(flat)

    return out_flat.reshape(B, T, H), speaker_id


if __name__ == "__main__":
    key = jax.random.PRNGKey(0)
    k1, k2 = jax.random.split(key)

    # Small shapes consistent with (hubert_vector: (B, T, H), speaker_id: (B,)).
    B, T, H = 2, 8, 32
    hubert_vector = jax.random.normal(k1, (B, T, H), dtype=jnp.float32)
    speaker_id = jax.random.randint(k2, (B,), 0, 10, dtype=jnp.int32)

    # Host-side snapshot of the expected values (taken before the aliased call).
    expected = np.asarray(jax.device_get(hubert_vector))

    out, sid = mel_model_forward(hubert_vector, speaker_id)
    out = jax.block_until_ready(out)
    sid = jax.block_until_ready(sid)

    # Sanity: identity pass-through must match the input exactly.
    assert out.shape == (B, T, H)
    assert out.dtype == hubert_vector.dtype
    assert np.array_equal(np.asarray(jax.device_get(out)), expected)
    assert sid.shape == (B,) and sid.dtype == jnp.int32

    print("KERNEL_OK")
</pallas_src>

<mosaic_0001>
module attributes {stable_mosaic.version = 11 : i64} {
  func.func @_copy_kernel(%arg0: i32, %arg1: memref<4x128xf32, #tpu.memory_space<vmem>>, %arg2: memref<4x128xf32, #tpu.memory_space<vmem>>) attributes {dimension_semantics = [#tpu.dimension_semantics<parallel>], iteration_bounds = array<i64: 1>, scalar_prefetch = 0 : i64, scratch_operands = 0 : i64, tpu.core_type = #tpu.core_type<tc>, window_params = [{transform_indices = @transform_0, window_bounds = array<i64: 4, 128>}, {transform_indices = @transform_1, window_bounds = array<i64: 4, 128>}]} {
    %c0 = arith.constant 0 : index
    %c0_0 = arith.constant 0 : index
    %0 = vector.load %arg1[%c0, %c0_0] : memref<4x128xf32, #tpu.memory_space<vmem>>, vector<4x128xf32>
    %c0_1 = arith.constant 0 : index
    %c0_2 = arith.constant 0 : index
    %1 = vector.load %arg2[%c0_1, %c0_2] : memref<4x128xf32, #tpu.memory_space<vmem>>, vector<4x128xf32>
    tpu.vector_store %arg2[%c0_1, %c0_2], %0 {strides = array<i32>} : memref<4x128xf32, #tpu.memory_space<vmem>>, vector<4x128xf32>,
    return
  }
  func.func @transform_0(%arg0: i32) -> (i32, i32) {
    %c0_i32 = arith.constant 0 : i32
    %c0_i32_0 = arith.constant 0 : i32
    return %arg0, %c0_i32 : i32, i32
  }
  func.func @transform_1(%arg0: i32) -> (i32, i32) {
    %c0_i32 = arith.constant 0 : i32
    %c0_i32_0 = arith.constant 0 : i32
    return %arg0, %c0_i32 : i32, i32
  }
}

</mosaic_0001>

<bundles_post_ra>
// kernel: tpu_custom_call.1
= control target key start
LH: loop header
LB: loop body
LE: loop exit
PB: predicated region body
PF: predicated region fallthrough
CT: control target
= control target key end

     0   :  { %6 = vsyncpa [#allocation3], 0  ;;  %s114_s0 = inlined_call_operand.hbm [shape: f32[4,128], index: 0, kind: input, shape index: {}, may-alias: {0,1}]   ;;  %s115_s1 = inlined_call_operand.hbm [shape: f32[4,128], index: 1, kind: output, shape index: {}, may-alias: {0,1}]  }
   0x1   :  { %7 = vsyncpa [#allocation4], 0  ;;  %s13_s8 = sshll.u32 %s114_s0, 4  ;;  %s96_s9 = smov [#allocation2]   ;;  %s14_s8 = int_to_ptr.hbm [resolvable:$true] %s13_s8 }
   0x2   :  { %s15_s10 = sshll.u32 %s96_s9, 4  ;;  %s16_s10 = int_to_ptr.vmem [resolvable:$true] %s15_s10 }
   0x3   :  { %18 = dma.hbm_to_vmem [thread:$0]  %s14_s8, 64, %s16_s10, [#allocation3]  }
   0x4   :  { %92 = dma.done.wait [#allocation3], 64  }
   0x5   :  { %93 = vsyncadd [#allocation3], 4294967232  ;;  %s97_s11 = smov [#allocation5]   ;;  %s32_s15 = sshll.u32 %s115_s1, 4  ;;  %v23_v0 = vld [vmem:[#allocation2] sm:$0xf]  ;;  %s33_s15 = int_to_ptr.hbm [resolvable:$true] %s32_s15 }
   0x6   :  { %s30_s12 = sshll.u32 %s97_s11, 4  ;;  %24 = vst [vmem:[#allocation5] sm:$0xf] %v23_v0  ;;  %s31_s12 = int_to_ptr.vmem [resolvable:$true] %s30_s12 }
   0x7   :  { %35 = dma.vmem_to_hbm [thread:$0]  %s31_s12, 64, %s33_s15, [#allocation4]  }
   0x8   :  { %94 = dma.done.wait [#allocation4], 64  }
   0x9   :  { %95 = vsyncadd [#allocation4], 4294967232 }
   0xa   :  { %40 = vsyncpa [#allocation3], 1 }
   0xb   :  { %41 = vsyncpa [#allocation4], 1 }

</bundles_post_ra>
